<compile_context>
chip_gen: v6e
topology: v6e:2x2x1
jax: 0.10.0
libtpu: 0.0.40
codegen_flags: <defaults>
</compile_context>

<pallas_src>
import jax
import jax.numpy as jnp
from jax import lax
from jax.experimental import pallas as pl
from jax.experimental.pallas import tpu as pltpu

BN_EPS = 1e-5
PAD_CLASSES = 128   # lane-dense logits slab width


def classifier_head_kernel(
    p_ref,    # (TB, C)            f32  pooled features (stand-in backbone input)
    w1_ref,   # (C, 512)           f32  Linear1 with stand-in projection + BN1 folded
    b1_ref,   # (1, 512)           f32
    w2_ref,   # (512, 256)         bf16 Linear2 with BN2 folded
    b2_ref,   # (1, 256)           f32
    w3_ref,   # (256, PAD_CLASSES) bf16 Linear3 zero-padded to 128 output lanes
    b3_ref,   # (1, PAD_CLASSES)   f32
    out_ref,  # (TB, PAD_CLASSES)  f32  padded logits
):
    pooled = p_ref[...]                                  # (TB, C) f32

    # ---- Linear1 (+ folded stand-in projection + BN1), K == C (tiny) --------
    # Done as C broadcast FMAs on the VPU instead of feeding a K=3 matmul to
    # the MXU.  All f32.
    n_ch = w1_ref.shape[0]
    h1 = b1_ref[...] + pooled[:, 0:1] * w1_ref[0:1, :]
    for c in range(1, n_ch):
        h1 = h1 + pooled[:, c:c + 1] * w1_ref[c:c + 1, :]
    h1 = jnp.maximum(h1, 0.0)                            # ReLU (Dropout == identity)

    # ---- Linear2 (+ folded BN2) + ReLU --------------------------------------
    h2 = jnp.dot(h1.astype(jnp.bfloat16), w2_ref[...],
                 preferred_element_type=jnp.float32) + b2_ref[...]
    h2 = jnp.maximum(h2, 0.0)

    # ---- Linear3 (padded to 128 lanes) --------------------------------------
    out_ref[...] = jnp.dot(h2.astype(jnp.bfloat16), w3_ref[...],
                           preferred_element_type=jnp.float32) + b3_ref[...]


def _prep_params(params, num_classes, pad_classes=PAD_CLASSES):
    """Fold BN into Linears, fold the stand-in projection into Linear1, pad Linear3."""
    # BN1 folded into Linear1, then the affine stand-in projection wp folded in:
    #   h1 = (pooled @ wp) @ (w1 * s1) + (b1 - m1) * s1 + be1
    #      =  pooled @ (wp @ (w1 * s1)) + b1_eff
    s1 = params["g1"] * lax.rsqrt(params["v1"] + BN_EPS)                 # (1, 512)
    w1e = (params["wp"] @ (params["w1"] * s1)).astype(jnp.float32)       # (C, 512)
    b1e = ((params["b1"] - params["m1"]) * s1 + params["be1"]).astype(jnp.float32)

    s2 = params["g2"] * lax.rsqrt(params["v2"] + BN_EPS)                 # (1, 256)
    w2e = (params["w2"] * s2).astype(jnp.bfloat16)                       # (512, 256)
    b2e = ((params["b2"] - params["m2"]) * s2 + params["be2"]).astype(jnp.float32)

    k3 = params["w3"].shape[0]
    w3p = jnp.zeros((k3, pad_classes), jnp.float32)
    w3p = w3p.at[:, :num_classes].set(params["w3"]).astype(jnp.bfloat16)
    b3p = jnp.zeros((1, pad_classes), jnp.float32)
    b3p = b3p.at[:, :num_classes].set(params["b3"])

    return w1e, b1e, w2e, b2e, w3p, b3p


def _round_up(x, m):
    return ((x + m - 1) // m) * m


def _pick_block_b(n):
    """Batch tile: fill the MXU M dim without padding tiny batches to 128 rows,
    and split large batches into >=2 grid steps so v7x's two TensorCores both
    get work.  256 rows x 128 lanes of f32 output + tiny weights stays far under
    every generation's scoped-VMEM default (16/32 MiB)."""
    half = max(1, (n + 1) // 2)
    return max(8, min(256, _round_up(half, 8)))


def fast_optimized_model_forward(x_nchw, params, num_classes=7):
    """x_nchw: (N, C, H, W) float32.  Returns logits (N, num_classes) float32."""
    N, C, H, W = x_nchw.shape

    # TODO(synk): real torchvision backbone (resnet101 conv stack) not
    # implemented; replaced by global-average-pool + linear projection, with the
    # projection folded into Linear1 inside _prep_params.
    pooled = jnp.mean(x_nchw.reshape(N, C, H * W), axis=-1)              # (N, C) f32

    w1e, b1e, w2e, b2e, w3p, b3p = _prep_params(params, num_classes)
    H1 = w1e.shape[1]
    H2 = w2e.shape[1]

    block_b = _pick_block_b(N)
    num_tiles = -(-N // block_b)
    n_pad = num_tiles * block_b
    if n_pad != N:
        # Padding only the tiny pooled (N, C) tensor -- a few bytes, not the images.
        pooled = jnp.pad(pooled, ((0, n_pad - N), (0, 0)))

    const = lambda shape: pl.BlockSpec(shape, lambda i: (0, 0))

    out_padded = pl.pallas_call(
        classifier_head_kernel,
        out_shape=jax.ShapeDtypeStruct((n_pad, PAD_CLASSES), jnp.float32),
        grid=(num_tiles,),
        in_specs=[
            pl.BlockSpec((block_b, C), lambda i: (i, 0)),   # pooled (pipelined)
            const((C, H1)), const((1, H1)),                 # w1_eff, b1_eff
            const((H1, H2)), const((1, H2)),                # w2', b2'
            const((H2, PAD_CLASSES)), const((1, PAD_CLASSES)),  # w3p, b3p
        ],
        out_specs=pl.BlockSpec((block_b, PAD_CLASSES), lambda i: (i, 0)),
        compiler_params=pltpu.CompilerParams(
            dimension_semantics=("parallel",)),
    )(pooled, w1e, b1e, w2e, b2e, w3p, b3p)

    return out_padded[:N, :num_classes]


def init_params(key, in_channels, feature_dim=2048, num_classes=7):
    """Deterministic synthetic parameters matching the module's shapes."""
    ks = jax.random.split(key, 8)

    def lin(k, fan_in, fan_out):
        return (jax.random.normal(k, (fan_in, fan_out), jnp.float32)
                * (1.0 / jnp.sqrt(fan_in)))

    row = lambda v, n: jnp.full((1, n), v, jnp.float32)

    return {
        # stand-in backbone projection
        "wp": lin(ks[0], in_channels, feature_dim),
        # Linear(feature_dim, 512) + BatchNorm1d(512)
        "w1": lin(ks[1], feature_dim, 512),
        "b1": jax.random.normal(ks[2], (1, 512), jnp.float32) * 0.01,
        "g1": row(1.0, 512), "be1": row(0.0, 512),
        "m1": row(0.0, 512), "v1": row(1.0, 512),
        # Linear(512, 256) + BatchNorm1d(256)
        "w2": lin(ks[3], 512, 256),
        "b2": jax.random.normal(ks[4], (1, 256), jnp.float32) * 0.01,
        "g2": row(1.0, 256), "be2": row(0.0, 256),
        "m2": row(0.0, 256), "v2": row(1.0, 256),
        # Linear(256, num_classes)
        "w3": lin(ks[5], 256, num_classes),
        "b3": jax.random.normal(ks[6], (1, num_classes), jnp.float32) * 0.01,
    }


def reference_forward(x_nchw, params):
    """Pure-JAX f32 reference (un-folded BN, eval mode)."""
    N, C, H, W = x_nchw.shape
    pooled = jnp.mean(x_nchw.reshape(N, C, H * W), axis=-1)
    feats = pooled @ params["wp"]
    h1 = feats @ params["w1"] + params["b1"]
    h1 = ((h1 - params["m1"]) * params["g1"]
          * lax.rsqrt(params["v1"] + BN_EPS) + params["be1"])
    h1 = jnp.maximum(h1, 0.0)
    h2 = h1 @ params["w2"] + params["b2"]
    h2 = ((h2 - params["m2"]) * params["g2"]
          * lax.rsqrt(params["v2"] + BN_EPS) + params["be2"])
    h2 = jnp.maximum(h2, 0.0)
    return h2 @ params["w3"] + params["b3"]


if __name__ == "__main__":
    key = jax.random.PRNGKey(0)
    k_x, k_p = jax.random.split(key)

    # Small deterministic image batch (PyTorch NCHW convention).
    B, C, H, W = 2, 3, 16, 16
    x = jax.random.normal(k_x, (B, C, H, W), jnp.float32)

    params = init_params(k_p, in_channels=C, feature_dim=2048, num_classes=7)

    logits = fast_optimized_model_forward(x, params)
    logits = jax.block_until_ready(logits)

    assert logits.shape == (B, 7) and logits.dtype == jnp.float32
    assert bool(jnp.all(jnp.isfinite(logits)))

    # Numerical check vs. f32 reference (loose tolerance: bf16 matmul operands).
    ref = reference_forward(x, params)
    assert bool(jnp.allclose(logits, ref, rtol=5e-2, atol=5e-2)), (
        "kernel output diverges from reference")

    print("KERNEL_OK")
</pallas_src>

<mosaic_0001>
module attributes {stable_mosaic.version = 11 : i64} {
  func.func @classifier_head_kernel(%arg0: i32, %arg1: memref<8x3xf32, #tpu.memory_space<vmem>>, %arg2: memref<3x512xf32, #tpu.memory_space<vmem>>, %arg3: memref<1x512xf32, #tpu.memory_space<vmem>>, %arg4: memref<512x256xbf16, #tpu.memory_space<vmem>>, %arg5: memref<1x256xf32, #tpu.memory_space<vmem>>, %arg6: memref<256x128xbf16, #tpu.memory_space<vmem>>, %arg7: memref<1x128xf32, #tpu.memory_space<vmem>>, %arg8: memref<8x128xf32, #tpu.memory_space<vmem>>) attributes {dimension_semantics = [#tpu.dimension_semantics<parallel>], iteration_bounds = array<i64: 1>, scalar_prefetch = 0 : i64, scratch_operands = 0 : i64, tpu.core_type = #tpu.core_type<tc>, window_params = [{transform_indices = @transform_0, window_bounds = array<i64: 8, 3>}, {pipeline_mode = #tpu.pipeline_mode<synchronous>, transform_indices = @transform_1, window_bounds = array<i64: 3, 512>}, {pipeline_mode = #tpu.pipeline_mode<synchronous>, transform_indices = @transform_2, window_bounds = array<i64: 1, 512>}, {pipeline_mode = #tpu.pipeline_mode<synchronous>, transform_indices = @transform_3, window_bounds = array<i64: 512, 256>}, {pipeline_mode = #tpu.pipeline_mode<synchronous>, transform_indices = @transform_4, window_bounds = array<i64: 1, 256>}, {pipeline_mode = #tpu.pipeline_mode<synchronous>, transform_indices = @transform_5, window_bounds = array<i64: 256, 128>}, {pipeline_mode = #tpu.pipeline_mode<synchronous>, transform_indices = @transform_6, window_bounds = array<i64: 1, 128>}, {transform_indices = @transform_7, window_bounds = array<i64: 8, 128>}]} {
    %c0 = arith.constant 0 : index
    %c0_0 = arith.constant 0 : index
    %0 = vector.load %arg1[%c0, %c0_0] : memref<8x3xf32, #tpu.memory_space<vmem>>, vector<8x3xf32>
    %c0_1 = arith.constant 0 : index
    %c0_2 = arith.constant 0 : index
    %1 = vector.load %arg3[%c0_1, %c0_2] : memref<1x512xf32, #tpu.memory_space<vmem>>, vector<1x512xf32>
    %2 = vector.extract_strided_slice %0 {offsets = [0, 0], sizes = [8, 1], strides = [1, 1]} : vector<8x3xf32> to vector<8x1xf32>
    %c0_3 = arith.constant 0 : index
    %c0_4 = arith.constant 0 : index
    %3 = vector.load %arg2[%c0_3, %c0_4] : memref<3x512xf32, #tpu.memory_space<vmem>>, vector<1x512xf32>
    %4 = vector.broadcast %2 : vector<8x1xf32> to vector<8x512xf32>
    %5 = vector.broadcast %3 : vector<1x512xf32> to vector<8x512xf32>
    %6 = arith.mulf %4, %5 : vector<8x512xf32>
    %7 = vector.broadcast %1 : vector<1x512xf32> to vector<8x512xf32>
    %8 = arith.addf %7, %6 : vector<8x512xf32>
    %9 = vector.extract_strided_slice %0 {offsets = [0, 1], sizes = [8, 1], strides = [1, 1]} : vector<8x3xf32> to vector<8x1xf32>
    %c1 = arith.constant 1 : index
    %c0_5 = arith.constant 0 : index
    %10 = vector.load %arg2[%c1, %c0_5] : memref<3x512xf32, #tpu.memory_space<vmem>>, vector<1x512xf32>
    %11 = vector.broadcast %9 : vector<8x1xf32> to vector<8x512xf32>
    %12 = vector.broadcast %10 : vector<1x512xf32> to vector<8x512xf32>
    %13 = arith.mulf %11, %12 : vector<8x512xf32>
    %14 = arith.addf %8, %13 : vector<8x512xf32>
    %15 = vector.extract_strided_slice %0 {offsets = [0, 2], sizes = [8, 1], strides = [1, 1]} : vector<8x3xf32> to vector<8x1xf32>
    %c2 = arith.constant 2 : index
    %c0_6 = arith.constant 0 : index
    %16 = vector.load %arg2[%c2, %c0_6] : memref<3x512xf32, #tpu.memory_space<vmem>>, vector<1x512xf32>
    %17 = vector.broadcast %15 : vector<8x1xf32> to vector<8x512xf32>
    %18 = vector.broadcast %16 : vector<1x512xf32> to vector<8x512xf32>
    %19 = arith.mulf %17, %18 : vector<8x512xf32>
    %20 = arith.addf %14, %19 : vector<8x512xf32>
    %cst = arith.constant 0.000000e+00 : f32
    %21 = vector.broadcast %cst : f32 to vector<8x512xf32>
    %22 = arith.maximumf %20, %21 : vector<8x512xf32>
    %23 = arith.truncf %22 : vector<8x512xf32> to vector<8x512xbf16>
    %c0_7 = arith.constant 0 : index
    %c0_8 = arith.constant 0 : index
    %24 = vector.load %arg4[%c0_7, %c0_8] : memref<512x256xbf16, #tpu.memory_space<vmem>>, vector<512x256xbf16>
    %cst_9 = arith.constant dense<0.000000e+00> : vector<8x256xf32>
    %25 = tpu.matmul %23, %24, %cst_9 {dimension_numbers = #tpu.dot_dimension_numbers<[1], [0], [0], [1], [0, 0, 1, 1], [], []>} : vector<8x512xbf16>, vector<512x256xbf16>, vector<8x256xf32> -> vector<8x256xf32>
    %c0_10 = arith.constant 0 : index
    %c0_11 = arith.constant 0 : index
    %26 = vector.load %arg5[%c0_10, %c0_11] : memref<1x256xf32, #tpu.memory_space<vmem>>, vector<1x256xf32>
    %27 = vector.broadcast %26 : vector<1x256xf32> to vector<8x256xf32>
    %28 = arith.addf %25, %27 : vector<8x256xf32>
    %cst_12 = arith.constant 0.000000e+00 : f32
    %29 = vector.broadcast %cst_12 : f32 to vector<8x256xf32>
    %30 = arith.maximumf %28, %29 : vector<8x256xf32>
    %31 = arith.truncf %30 : vector<8x256xf32> to vector<8x256xbf16>
    %c0_13 = arith.constant 0 : index
    %c0_14 = arith.constant 0 : index
    %32 = vector.load %arg6[%c0_13, %c0_14] : memref<256x128xbf16, #tpu.memory_space<vmem>>, vector<256x128xbf16>
    %cst_15 = arith.constant dense<0.000000e+00> : vector<8x128xf32>
    %33 = tpu.matmul %31, %32, %cst_15 {dimension_numbers = #tpu.dot_dimension_numbers<[1], [0], [0], [1], [0, 0, 1, 1], [], []>} : vector<8x256xbf16>, vector<256x128xbf16>, vector<8x128xf32> -> vector<8x128xf32>
    %c0_16 = arith.constant 0 : index
    %c0_17 = arith.constant 0 : index
    %34 = vector.load %arg7[%c0_16, %c0_17] : memref<1x128xf32, #tpu.memory_space<vmem>>, vector<1x128xf32>
    %35 = vector.broadcast %34 : vector<1x128xf32> to vector<8x128xf32>
    %36 = arith.addf %33, %35 : vector<8x128xf32>
    %c0_18 = arith.constant 0 : index
    %c0_19 = arith.constant 0 : index
    %37 = vector.load %arg8[%c0_18, %c0_19] : memref<8x128xf32, #tpu.memory_space<vmem>>, vector<8x128xf32>
    tpu.vector_store %arg8[%c0_18, %c0_19], %36 {strides = array<i32>} : memref<8x128xf32, #tpu.memory_space<vmem>>, vector<8x128xf32>,
    return
  }
  func.func @transform_0(%arg0: i32) -> (i32, i32) {
    %c0_i32 = arith.constant 0 : i32
    %c0_i32_0 = arith.constant 0 : i32
    return %arg0, %c0_i32 : i32, i32
  }
  func.func @transform_1(%arg0: i32) -> (i32, i32) {
    %c0_i32 = arith.constant 0 : i32
    %c0_i32_0 = arith.constant 0 : i32
    %c0_i32_1 = arith.constant 0 : i32
    return %c0_i32, %c0_i32_0 : i32, i32
  }
  func.func @transform_2(%arg0: i32) -> (i32, i32) {
    %c0_i32 = arith.constant 0 : i32
    %c0_i32_0 = arith.constant 0 : i32
    %c0_i32_1 = arith.constant 0 : i32
    return %c0_i32, %c0_i32_0 : i32, i32
  }
  func.func @transform_3(%arg0: i32) -> (i32, i32) {
    %c0_i32 = arith.constant 0 : i32
    %c0_i32_0 = arith.constant 0 : i32
    %c0_i32_1 = arith.constant 0 : i32
    return %c0_i32, %c0_i32_0 : i32, i32
  }
  func.func @transform_4(%arg0: i32) -> (i32, i32) {
    %c0_i32 = arith.constant 0 : i32
    %c0_i32_0 = arith.constant 0 : i32
    %c0_i32_1 = arith.constant 0 : i32
    return %c0_i32, %c0_i32_0 : i32, i32
  }
  func.func @transform_5(%arg0: i32) -> (i32, i32) {
    %c0_i32 = arith.constant 0 : i32
    %c0_i32_0 = arith.constant 0 : i32
    %c0_i32_1 = arith.constant 0 : i32
    return %c0_i32, %c0_i32_0 : i32, i32
  }
  func.func @transform_6(%arg0: i32) -> (i32, i32) {
    %c0_i32 = arith.constant 0 : i32
    %c0_i32_0 = arith.constant 0 : i32
    %c0_i32_1 = arith.constant 0 : i32
    return %c0_i32, %c0_i32_0 : i32, i32
  }
  func.func @transform_7(%arg0: i32) -> (i32, i32) {
    %c0_i32 = arith.constant 0 : i32
    %c0_i32_0 = arith.constant 0 : i32
    return %arg0, %c0_i32 : i32, i32
  }
}

</mosaic_0001>

<bundles_post_ra>
// kernel: tpu_custom_call.1
= control target key start
LH: loop header
LB: loop body
LE: loop exit
PB: predicated region body
PF: predicated region fallthrough
CT: control target
= control target key end

     0   :  { %12 = vsyncpa [#allocation3], 0  ;;  %s1282_s0 = inlined_call_operand.vmem [shape: f32[8,3], index: 0, kind: input, shape index: {}]   ;;  %s1283_s1 = inlined_call_operand.hbm [shape: f32[3,512], index: 1, kind: input, shape index: {}]   ;;  %s1284_s2 = inlined_call_operand.vmem [shape: f32[1,512], index: 2, kind: input, shape index: {}]   ;;  %s1285_s3 = inlined_call_operand.hbm [shape: bf16[512,256], index: 3, kind: input, shape index: {}]   ;;  %s1286_s4 = inlined_call_operand.vmem [shape: f32[1,256], index: 4, kind: input, shape index: {}]   ;;  %s1287_s5 = inlined_call_operand.hbm [shape: bf16[256,128], index: 5, kind: input, shape index: {}]   ;;  %s1288_s6 = inlined_call_operand.vmem [shape: f32[1,128], index: 6, kind: input, shape index: {}]   ;;  %s1289_s7 = inlined_call_operand.hbm [shape: f32[8,128], index: 7, kind: output, shape index: {}]  }
   0x1   :  { %13 = vsyncpa [#allocation6], 0 }
   0x2   :  { %14 = vsyncpa [#allocation4], 0  ;;  %s1193_s24 = smov [#allocation5]  }
   0x3   :  { %s34_s25 = sshll.u32 %s1193_s24, 4  ;;  %s35_s25 = int_to_ptr.vmem [resolvable:$true] %s34_s25 }
   0x4   :  { %s1115_s26 = scalar_lea.vmem %s35_s25, 8192  ;;  %p1120_p1 = scmp.lt.s32.totalorder %s35_s25, %s35_s25 }
   0x5   :  { %p1116_p0 = scmp.ne.s32.totalorder %s35_s25, %s1115_s26  ;;  %p1121_p2 = scmp.lt.s32.totalorder %s1115_s26, %s1115_s26 }
   0x7   :  { %p1122_p3 = por %p1121_p2, %p1120_p1 }
   0x9   :  { %p1123_p4 = pnand %p1122_p3, %p1116_p0 }
   0xb   :  { %1126 = shalt.err (!%p1123_p4)
}
   0xc   :  { %s1194_s27 = smov 128   ;;  %s1195_s28 = smov 8  }
   0xd   :  { %40 = dma.hbm_to_vmem [thread:$0]  %s1285_s3, 8192, %s35_s25, [#allocation6], %s1194_s27, %s1194_s27, %s1195_s28  }
   0xe   :  { %s1196_s8 = smov [#allocation2]   ;;  %s1197_s10 = smov [#allocation7]  }
   0xf   :  { %s23_s9 = sshll.u32 %s1196_s8, 4  ;;  %s48_s11 = sshll.u32 %s1197_s10, 4  ;;  %s24_s9 = int_to_ptr.vmem [resolvable:$true] %s23_s9  ;;  %s49_s11 = int_to_ptr.vmem [resolvable:$true] %s48_s11 }
  0x10   :  { %s1135_s12 = scalar_lea.vmem %s24_s9, 256  ;;  %p1140_p6 = scmp.lt.s32.totalorder %s24_s9, %s24_s9 }
  0x11   :  { %p1136_p5 = scmp.ne.s32.totalorder %s24_s9, %s1135_s12  ;;  %p1141_p7 = scmp.lt.s32.totalorder %s1135_s12, %s1135_s12 }
  0x13   :  { %p1142_p8 = por %p1141_p7, %p1140_p6 }
  0x15   :  { %p1143_p9 = pnand %p1142_p8, %p1136_p5 }
  0x17   :  { %1146 = shalt.err (!%p1143_p9)
}
  0x18   :  { %26 = dma.hbm_to_vmem [thread:$0]  %s1283_s1, 256, %s24_s9, [#allocation3]  }
  0x19   :  { %s1155_s15 = scalar_lea.vmem %s49_s11, 2048  ;;  %p1160_p11 = scmp.lt.s32.totalorder %s49_s11, %s49_s11 }
  0x1a   :  { %p1156_p10 = scmp.ne.s32.totalorder %s49_s11, %s1155_s15  ;;  %p1161_p12 = scmp.lt.s32.totalorder %s1155_s15, %s1155_s15 }
  0x1c   :  { %p1162_p13 = por %p1161_p12, %p1160_p11 }
  0x1e   :  { %p1163_p0 = pnand %p1162_p13, %p1156_p10 }
  0x20   :  { %1166 = shalt.err (!%p1163_p0)
}
  0x21   :  { %s1198_s3 = smov 64   ;;  %s1199_s16 = smov 4  }
  0x22   :  { %54 = dma.hbm_to_vmem [thread:$0]  %s1287_s5, 2048, %s49_s11, [#allocation6], %s1198_s3, %s1198_s3, %s1199_s16  }
  0x23   :  { %1187 = dma.done.wait [#allocation3], 256  }
  0x24   :  { %1188 = vsyncadd [#allocation3], 4294967040 }
  0x25   :  { %1189 = dma.done.wait [#allocation6], 10240  }
  0x26   :  { %1190 = vsyncadd [#allocation6], 4294957056  ;;  %v1200_v0 = vmov 0   ;;  %v1201_v1 = vmov 2   ;;  %v67_v2 = vld [vmem:[%s1282_s0] sm:$0xff]  ;;  %v1202_v9 = vmov 1  }
  0x27   :  { %991 = vset.pattern.permute.xlu0 %v1200_v0  ;;  %993 = vset.pattern.permute.xlu1 %v1201_v1  ;;  %v995_v3 = vld [vmem:[#allocation5 + $0x74] ss:$8 sps:$4 sm:$0xff]   ;;  %v999_v5 = vld [vmem:[#allocation5 + $0x70] ss:$8 sps:$4 sm:$0xff]   ;;  %v1001_v7 = vld [vmem:[#allocation5 + $0x64] ss:$8 sps:$4 sm:$0xff]  }
  0x28   :  { %72 = vperm.xlu0 %991, %v67_v2   ;;  %163 = vperm.xlu1 %993, %v67_v2   ;;  %v997_v4 = vld [vmem:[#allocation5 + $0x174] ss:$8 sps:$4 sm:$0xff]   ;;  %v1000_v6 = vld [vmem:[#allocation5 + $0x170] ss:$8 sps:$4 sm:$0xff]   ;;  %v1003_v8 = vld [vmem:[#allocation5 + $0x164] ss:$8 sps:$4 sm:$0xff]  }
  0x29   :  { %599 = vmatprep.subr.bf16.mxu0 %v995_v3  ;;  %640 = vmatprep.subr.bf16.mxu1 %v997_v4  ;;  %v1005_v10 = vld [vmem:[#allocation5 + $0x60] ss:$8 sps:$4 sm:$0xff]   ;;  %v1007_v12 = vld [vmem:[#allocation5 + $0x54] ss:$8 sps:$4 sm:$0xff]   ;;  %v1011_v14 = vld [vmem:[#allocation5 + $0x50] ss:$8 sps:$4 sm:$0xff]  }
  0x2a   :  { %600 = vmatpush1.bf16.msra.mxu0 %v999_v5  ;;  %641 = vmatpush1.bf16.msra.mxu1 %v1000_v6  ;;  %v1006_v11 = vld [vmem:[#allocation5 + $0x160] ss:$8 sps:$4 sm:$0xff]   ;;  %v1009_v13 = vld [vmem:[#allocation5 + $0x154] ss:$8 sps:$4 sm:$0xff]   ;;  %v1012_v15 = vld [vmem:[#allocation5 + $0x150] ss:$8 sps:$4 sm:$0xff]   ;;  %v76_v5 = vlaneseq }
  0x2b   :  { %601 = vmatprep.subr.bf16.mxu0 %v1001_v7  ;;  %642 = vmatprep.subr.bf16.mxu1 %v1003_v8  ;;  %v1013_v16 = vld [vmem:[#allocation5 + $0x44] ss:$8 sps:$4 sm:$0xff]   ;;  %v1017_v18 = vld [vmem:[#allocation5 + $0x40] ss:$8 sps:$4 sm:$0xff]   ;;  %v1019_v20 = vld [vmem:[#allocation5 + $0x34] ss:$8 sps:$4 sm:$0xff]  }
  0x2c   :  { %992 = vset.pattern.permute.xlu0 %v1202_v9  ;;  %v1015_v17 = vld [vmem:[#allocation5 + $0x144] ss:$8 sps:$4 sm:$0xff]   ;;  %v1018_v19 = vld [vmem:[#allocation5 + $0x140] ss:$8 sps:$4 sm:$0xff]   ;;  %v1021_v21 = vld [vmem:[#allocation5 + $0x134] ss:$8 sps:$4 sm:$0xff]  }
  0x2d   :  { %128 = vperm.xlu0 %992, %v67_v2   ;;  %v1023_v22 = vld [vmem:[#allocation5 + $0x30] ss:$8 sps:$4 sm:$0xff]   ;;  %v1025_v24 = vld [vmem:[#allocation5 + $0x24] ss:$8 sps:$4 sm:$0xff]   ;;  %v1029_v26 = vld [vmem:[#allocation5 + $0x20] ss:$8 sps:$4 sm:$0xff]  }
  0x2e   :  { %602 = vmatpush1.bf16.msra.mxu0 %v1005_v10  ;;  %643 = vmatpush1.bf16.msra.mxu1 %v1006_v11  ;;  %v1024_v23 = vld [vmem:[#allocation5 + $0x130] ss:$8 sps:$4 sm:$0xff]   ;;  %v1027_v25 = vld [vmem:[#allocation5 + $0x124] ss:$8 sps:$4 sm:$0xff]   ;;  %v1030_v27 = vld [vmem:[#allocation5 + $0x120] ss:$8 sps:$4 sm:$0xff]  }
  0x2f   :  { %603 = vmatprep.subr.bf16.mxu0 %v1007_v12  ;;  %644 = vmatprep.subr.bf16.mxu1 %v1009_v13  ;;  %v1031_v28 = vld [vmem:[#allocation5 + $0x14] ss:$8 sps:$4 sm:$0xff]   ;;  %v1035_v30 = vld [vmem:[#allocation5 + $0x10] ss:$8 sps:$4 sm:$0xff]   ;;  %v1037_v32 = vld [vmem:[#allocation5 + $0x4] ss:$8 sps:$4 sm:$0xff]  }
  0x30   :  { %v1033_v29 = vld [vmem:[#allocation5 + $0x114] ss:$8 sps:$4 sm:$0xff]   ;;  %v1036_v31 = vld [vmem:[#allocation5 + $0x110] ss:$8 sps:$4 sm:$0xff]   ;;  %v1039_v33 = vld [vmem:[#allocation5 + $0x104] ss:$8 sps:$4 sm:$0xff]  }
  0x31   :  { %994 = vset.pattern.permute.xlu0 %v1201_v1  ;;  %v1041_v34 = vld [vmem:[#allocation5] ss:$8 sps:$4 sm:$0xff]   ;;  %v1043_v36 = vld [vmem:[#allocation5 + $0xf4] ss:$8 sps:$4 sm:$0xff]   ;;  %v1047_v38 = vld [vmem:[#allocation5 + $0xf0] ss:$8 sps:$4 sm:$0xff]  }
  0x32   :  { %604 = vmatpush1.bf16.msra.mxu0 %v1011_v14  ;;  %645 = vmatpush1.bf16.msra.mxu1 %v1012_v15  ;;  %v1042_v35 = vld [vmem:[#allocation5 + $0x100] ss:$8 sps:$4 sm:$0xff]   ;;  %v1045_v37 = vld [vmem:[#allocation5 + $0x1f4] ss:$8 sps:$4 sm:$0xff]   ;;  %v1048_v39 = vld [vmem:[#allocation5 + $0x1f0] ss:$8 sps:$4 sm:$0xff]  }
  0x33   :  { %605 = vmatprep.subr.bf16.mxu0 %v1013_v16  ;;  %646 = vmatprep.subr.bf16.mxu1 %v1015_v17  ;;  %v1049_v40 = vld [vmem:[#allocation5 + $0xe4] ss:$8 sps:$4 sm:$0xff]   ;;  %v1053_v42 = vld [vmem:[#allocation5 + $0xe0] ss:$8 sps:$4 sm:$0xff]   ;;  %v1055_v44 = vld [vmem:[#allocation5 + $0xd4] ss:$8 sps:$4 sm:$0xff]  }
  0x34   :  { %v1051_v41 = vld [vmem:[#allocation5 + $0x1e4] ss:$8 sps:$4 sm:$0xff]   ;;  %v1054_v43 = vld [vmem:[#allocation5 + $0x1e0] ss:$8 sps:$4 sm:$0xff]   ;;  %v1057_v45 = vld [vmem:[#allocation5 + $0x1d4] ss:$8 sps:$4 sm:$0xff]  }
  0x35   :  { %v1059_v46 = vld [vmem:[#allocation5 + $0xd0] ss:$8 sps:$4 sm:$0xff]   ;;  %v1061_v48 = vld [vmem:[#allocation5 + $0xc4] ss:$8 sps:$4 sm:$0xff]   ;;  %v1065_v50 = vld [vmem:[#allocation5 + $0xc0] ss:$8 sps:$4 sm:$0xff]  }
  0x36   :  { %606 = vmatpush1.bf16.msra.mxu0 %v1017_v18  ;;  %647 = vmatpush1.bf16.msra.mxu1 %v1018_v19  ;;  %v1060_v47 = vld [vmem:[#allocation5 + $0x1d0] ss:$8 sps:$4 sm:$0xff]   ;;  %v1063_v49 = vld [vmem:[#allocation5 + $0x1c4] ss:$8 sps:$4 sm:$0xff]   ;;  %v1066_v51 = vld [vmem:[#allocation5 + $0x1c0] ss:$8 sps:$4 sm:$0xff]  }
  0x37   :  { %607 = vmatprep.subr.bf16.mxu0 %v1019_v20  ;;  %648 = vmatprep.subr.bf16.mxu1 %v1021_v21  ;;  %v1067_v52 = vld [vmem:[#allocation5 + $0xb4] ss:$8 sps:$4 sm:$0xff]   ;;  %v1071_v54 = vld [vmem:[#allocation5 + $0xb0] ss:$8 sps:$4 sm:$0xff]   ;;  %v1073_v56 = vld [vmem:[#allocation5 + $0xa4] ss:$8 sps:$4 sm:$0xff]  }
  0x38   :  { %v1069_v53 = vld [vmem:[#allocation5 + $0x1b4] ss:$8 sps:$4 sm:$0xff]   ;;  %v1072_v55 = vld [vmem:[#allocation5 + $0x1b0] ss:$8 sps:$4 sm:$0xff]   ;;  %v1075_v57 = vld [vmem:[#allocation5 + $0x1a4] ss:$8 sps:$4 sm:$0xff]  }
  0x39   :  { %v1077_v58 = vld [vmem:[#allocation5 + $0xa0] ss:$8 sps:$4 sm:$0xff]   ;;  %v1079_v60 = vld [vmem:[#allocation5 + $0x94] ss:$8 sps:$4 sm:$0xff]   ;;  %v1083_v62 = vld [vmem:[#allocation5 + $0x90] ss:$8 sps:$4 sm:$0xff]  }
  0x3a   :  { %608 = vmatpush1.bf16.msra.mxu0 %v1023_v22  ;;  %649 = vmatpush1.bf16.msra.mxu1 %v1024_v23  ;;  %v1078_v59 = vld [vmem:[#allocation5 + $0x1a0] ss:$8 sps:$4 sm:$0xff]   ;;  %v1081_v61 = vld [vmem:[#allocation5 + $0x194] ss:$8 sps:$4 sm:$0xff]   ;;  %v1084_v63 = vld [vmem:[#allocation5 + $0x190] ss:$8 sps:$4 sm:$0xff]  }
  0x3b   :  { %609 = vmatprep.subr.bf16.mxu0 %v1025_v24  ;;  %650 = vmatprep.subr.bf16.mxu1 %v1027_v25  ;;  %v1085_v0 = vld [vmem:[#allocation5 + $0x84] ss:$8 sps:$4 sm:$0xff]   ;;  %v1089_v2 = vld [vmem:[#allocation5 + $0x80] ss:$8 sps:$4 sm:$0xff]   ;;  %v1091_v4 = vld [vmem:[#allocation7 + $0x78] sm:$0xff]   ;;  %v77_v6 = vshrl.u32 %v76_v5, 7 }
  0x3c   :  { %v1087_v1 = vld [vmem:[#allocation5 + $0x184] ss:$8 sps:$4 sm:$0xff]   ;;  %v1090_v3 = vld [vmem:[#allocation5 + $0x180] ss:$8 sps:$4 sm:$0xff]   ;;  %v68_v12 = vld [vmem:[%s1284_s2] sm:$0xf] }
  0x3d   :  { %v1256_v7 = vsub.s32 0, %v77_v6  ;;  %v1258_v8 = vsub.s32 1, %v77_v6  ;;  %v86_v9 = vsub.s32 2, %v77_v6  ;;  %v90_v10 = vsub.s32 3, %v77_v6  ;;  %v1095_v5 = vld [vmem:[#allocation7 + $0x68] sm:$0xff]   ;;  %s1203_s22 = smov [#allocation8]  }
  0x3e   :  { %610 = vmatpush1.bf16.msra.mxu0 %v1029_v26  ;;  %651 = vmatpush1.bf16.msra.mxu1 %v1030_v27  ;;  %v69_v11 = vld [vmem:[#allocation2] ss:$4 sm:$0xf]  ;;  %v161_v17 = vld [vmem:[#allocation2 + $0x2] ss:$4 sm:$0xf] }
  0x3f   :  { %611 = vmatprep.subr.bf16.mxu0 %v1031_v28  ;;  %652 = vmatprep.subr.bf16.mxu1 %v1033_v29  ;;  %v79_v13 = vrot.slane %v69_v11, %v1256_v7  ;;  %v83_v14 = vrot.slane %v69_v11, %v1258_v8  ;;  %v87_v15 = vrot.slane %v69_v11, %v86_v9  ;;  %v126_v20 = vld [vmem:[#allocation2 + $0x1] ss:$4 sm:$0xf]  ;;  %v1096_v6 = vld [vmem:[#allocation7 + $0x28] sm:$0xff]   ;;  %s867_s23 = sshll.u32 %s1203_s22, 4  ;;  %s868_s23 = int_to_ptr.vmem [resolvable:$true] %s867_s23 }
  0x40   :  { %v91_v16 = vrot.slane %v69_v11, %v90_v10  ;;  %v104_v18 = vrot.slane %v68_v12, %v1256_v7  ;;  %v112_v19 = vrot.slane %v68_v12, %v86_v9  ;;  %v108_v21 = vrot.slane %v68_v12, %v1258_v8  ;;  %v1099_v11 = vld [vmem:[#allocation7 + $0x58] sm:$0xff]   ;;  %s1167_s24 = scalar_lea.vmem %s868_s23, 128  ;;  %p1172_p2 = scmp.lt.s32.totalorder %s868_s23, %s868_s23 }
  0x41   :  { %v116_v22 = vrot.slane %v68_v12, %v90_v10  ;;  %v170_v24 = vrot.slane %v161_v17, %v1256_v7  ;;  %v178_v25 = vrot.slane %v161_v17, %v86_v9  ;;  %v174_v26 = vrot.slane %v161_v17, %v1258_v8  ;;  %v1100_v12 = vld [vmem:[#allocation7 + $0x18] sm:$0xff]   ;;  %p1168_p1 = scmp.ne.s32.totalorder %s868_s23, %s1167_s24  ;;  %p1173_p3 = scmp.lt.s32.totalorder %s1167_s24, %s1167_s24 }
  0x42   :  { %612 = vmatpush1.bf16.msra.mxu0 %v1035_v30  ;;  %653 = vmatpush1.bf16.msra.mxu1 %v1036_v31  ;;  %v182_v27 = vrot.slane %v161_v17, %v90_v10  ;;  %v1105_v17 = vld [vmem:[#allocation7 + $0x40] sm:$0xff]  }
  0x43   :  { %613 = vmatprep.subr.bf16.mxu0 %v1037_v32  ;;  %654 = vmatprep.subr.bf16.mxu1 %v1039_v33  ;;  %v135_v33 = vrot.slane %v126_v20, %v1256_v7  ;;  %p1174_p4 = por %p1173_p3, %p1172_p2 }
  0x45   :  { %p1175_p5 = pnand %p1174_p4, %p1168_p1 }
  0x46   :  { %614 = vmatpush1.bf16.msra.mxu0 %v1041_v34  ;;  %655 = vmatpush1.bf16.msra.mxu1 %v1042_v35  ;;  %v139_v34 = vrot.slane %v126_v20, %v1258_v8  ;;  %v143_v35 = vrot.slane %v126_v20, %v86_v9  ;;  %v1097_v9 = vld [vmem:[#allocation7 + $0x60] sm:$0xff]  }
  0x47   :  { %615 = vmatprep.subr.bf16.mxu0 %v1043_v36  ;;  %656 = vmatprep.subr.bf16.mxu1 %v1045_v37  ;;  %v147_v36 = vrot.slane %v126_v20, %v90_v10  ;;  %v1098_v10 = vld [vmem:[#allocation7 + $0x20] sm:$0xff]  }
  0x4a   :  { %616 = vmatpush2.bf16.msra.mxu0 %v1047_v38  ;;  %657 = vmatpush2.bf16.msra.mxu1 %v1048_v39 }
  0x4b   :  { %617 = vmatprep.subr.bf16.mxu0 %v1049_v40  ;;  %658 = vmatprep.subr.bf16.mxu1 %v1051_v41 }
  0x4e   :  { %618 = vmatpush2.bf16.msra.mxu0 %v1053_v42  ;;  %659 = vmatpush2.bf16.msra.mxu1 %v1054_v43 }
  0x4f   :  { %619 = vmatprep.subr.bf16.mxu0 %v1055_v44  ;;  %660 = vmatprep.subr.bf16.mxu1 %v1057_v45 }
  0x52   :  { %620 = vmatpush2.bf16.msra.mxu0 %v1059_v46  ;;  %661 = vmatpush2.bf16.msra.mxu1 %v1060_v47 }
  0x53   :  { %621 = vmatprep.subr.bf16.mxu0 %v1061_v48  ;;  %662 = vmatprep.subr.bf16.mxu1 %v1063_v49 }
  0x56   :  { %622 = vmatpush2.bf16.msra.mxu0 %v1065_v50  ;;  %663 = vmatpush2.bf16.msra.mxu1 %v1066_v51 }
  0x57   :  { %623 = vmatprep.subr.bf16.mxu0 %v1067_v52  ;;  %664 = vmatprep.subr.bf16.mxu1 %v1069_v53 }
  0x5a   :  { %624 = vmatpush2.bf16.msra.mxu0 %v1071_v54  ;;  %665 = vmatpush2.bf16.msra.mxu1 %v1072_v55 }
  0x5b   :  { %625 = vmatprep.subr.bf16.mxu0 %v1073_v56  ;;  %666 = vmatprep.subr.bf16.mxu1 %v1075_v57 }
  0x5e   :  { %626 = vmatpush2.bf16.msra.mxu0 %v1077_v58  ;;  %667 = vmatpush2.bf16.msra.mxu1 %v1078_v59 }
  0x5f   :  { %627 = vmatprep.subr.bf16.mxu0 %v1079_v60  ;;  %668 = vmatprep.subr.bf16.mxu1 %v1081_v61 }
  0x62   :  { %628 = vmatpush2.bf16.msra.mxu0 %v1083_v62  ;;  %669 = vmatpush2.bf16.msra.mxu1 %v1084_v63 }
  0x63   :  { %629 = vmatprep.subr.bf16.mxu0 %v1085_v0  ;;  %670 = vmatprep.subr.bf16.mxu1 %v1087_v1 }
  0x66   :  { %630 = vmatpush2.bf16.msra.mxu0 %v1089_v2  ;;  %671 = vmatpush2.bf16.msra.mxu1 %v1090_v3  ;;  %v1092_v2 = vld [vmem:[#allocation7 + $0x38] sm:$0xff]   ;;  %v1093_v3 = vld [vmem:[#allocation7 + $0x70] sm:$0xff]  }
  0x67   :  { %958 = vmatprep.subr.bf16.mxu0 %v1091_v4  ;;  %v1094_v4 = vld [vmem:[#allocation7 + $0x30] sm:$0xff]  }
  0xa3   :  { %v73_v23 = vpop.permute.xlu0 %72  ;;  %v164_v32 = vpop.permute.xlu1 %163 }
  0xa4   :  { %v96_v28 = vmul.f32 %v79_v13, %v73_v23  ;;  %v97_v29 = vmul.f32 %v83_v14, %v73_v23  ;;  %v98_v30 = vmul.f32 %v87_v15, %v73_v23  ;;  %v99_v31 = vmul.f32 %v91_v16, %v73_v23  ;;  %v1101_v13 = vld [vmem:[#allocation7 + $0x50] sm:$0xff]   ;;  %v1103_v15 = vld [vmem:[#allocation7 + $0x48] sm:$0xff]  }
  0xa5   :  { %v187_v37 = vmul.f32 %v170_v24, %v164_v32  ;;  %v189_v38 = vmul.f32 %v178_v25, %v164_v32  ;;  %v188_v39 = vmul.f32 %v174_v26, %v164_v32  ;;  %v190_v40 = vmul.f32 %v182_v27, %v164_v32  ;;  %v1102_v14 = vld [vmem:[#allocation7 + $0x10] sm:$0xff]   ;;  %v1104_v16 = vld [vmem:[#allocation7 + $0x8] sm:$0xff]  }
  0xa6   :  { %v121_v41 = vadd.f32 %v104_v18, %v96_v28  ;;  %v123_v42 = vadd.f32 %v112_v19, %v98_v30  ;;  %v122_v44 = vadd.f32 %v108_v21, %v97_v29  ;;  %v124_v45 = vadd.f32 %v116_v22, %v99_v31  ;;  %v1106_v18 = vld [vmem:[#allocation7] sm:$0xff]   ;;  %v267_v19 = vld [vmem:[%s1286_s4] sm:$0x3] }
  0xa7   :  { %v272_v20 = vrot.slane %v267_v19, %v1256_v7  ;;  %v276_v21 = vrot.slane %v267_v19, %v1258_v8  ;;  %v941_v8 = vld [vmem:[%s1288_s6] ss:$0 sm:$0xff] }
  0xa8   :  { %v129_v43 = vpop.permute.xlu0 %128 }
  0xa9   :  { %v152_v46 = vmul.f32 %v135_v33, %v129_v43  ;;  %v153_v47 = vmul.f32 %v139_v34, %v129_v43  ;;  %v154_v48 = vmul.f32 %v143_v35, %v129_v43  ;;  %v155_v49 = vmul.f32 %v147_v36, %v129_v43 }
  0xab   :  { %v156_v50 = vadd.f32 %v152_v46, %v121_v41  ;;  %v158_v51 = vadd.f32 %v154_v48, %v123_v42  ;;  %v157_v52 = vadd.f32 %v153_v47, %v122_v44  ;;  %v159_v53 = vadd.f32 %v155_v49, %v124_v45 }
  0xad   :  { %v192_v54 = vadd.f32 %v188_v39, %v157_v52  ;;  %v194_v55 = vadd.f32 %v190_v40, %v159_v53  ;;  %v191_v56 = vadd.f32 %v187_v37, %v156_v50  ;;  %v193_v57 = vadd.f32 %v189_v38, %v158_v51 }
  0xaf   :  { %v196_v58 = vmax.f32 %v192_v54, 0.0  ;;  %v198_v59 = vmax.f32 %v194_v55, 0.0  ;;  %v195_v60 = vmax.f32 %v191_v56, 0.0  ;;  %v197_v61 = vmax.f32 %v193_v57, 0.0 }
  0xb1   :  { %v200_v62 = vpack.c.bf16 %v196_v58, %v196_v58  ;;  %v202_v63 = vpack.c.bf16 %v198_v59, %v198_v59  ;;  %v199_v0 = vpack.c.bf16 %v195_v60, %v195_v60  ;;  %v201_v1 = vpack.c.bf16 %v197_v61, %v197_v61 }
  0xb3   :  { %631 = vmatprep.mubr.bf16.mxu0 %v200_v62  ;;  %672 = vmatprep.mubr.bf16.mxu1 %v202_v63 }
  0xb4   :  { %632 = vmatmul.mubr.bf16.vlgmr.msra.gmra.mxu0 %v199_v0  ;;  %673 = vmatmul.mubr.bf16.vlgmr.msra.gmra.mxu1 %v201_v1 }
  0xb5   :  { %959 = vmatpush3.bf16.msra.mxu0 %v1092_v2 }
  0xb6   :  { %960 = vmatprep.subr.bf16.mxu0 %v1093_v3 }
  0xb9   :  { %961 = vmatpush3.bf16.msra.mxu0 %v1094_v4 }
  0xba   :  { %962 = vmatprep.subr.bf16.mxu0 %v1095_v5 }
  0xbd   :  { %963 = vmatpush3.bf16.msra.mxu0 %v1096_v6 }
  0xbe   :  { %964 = vmatprep.subr.bf16.mxu0 %v1097_v9 }
  0xc1   :  { %965 = vmatpush3.bf16.msra.mxu0 %v1098_v10 }
  0xc2   :  { %966 = vmatprep.subr.bf16.mxu0 %v1099_v11 }
  0xc5   :  { %967 = vmatpush3.bf16.msra.mxu0 %v1100_v12 }
  0xc6   :  { %968 = vmatprep.subr.bf16.mxu0 %v1101_v13 }
  0xc9   :  { %969 = vmatpush3.bf16.msra.mxu0 %v1102_v14 }
  0xca   :  { %970 = vmatprep.subr.bf16.mxu0 %v1103_v15 }
  0xcd   :  { %971 = vmatpush3.bf16.msra.mxu0 %v1104_v16 }
  0xce   :  { %972 = vmatprep.subr.bf16.mxu0 %v1105_v17 }
  0xd1   :  { %973 = vmatpush3.bf16.msra.mxu0 %v1106_v18 }
 0x174   :  { %v633_v22 = vpop.f32.mrf.mxu0  ;;  %v674_v23 = vpop.f32.mrf.mxu1 }
 0x175   :  { %v634_v24 = vadd.f32 %v633_v22, %v272_v20 }
 0x176   :  { %v635_v25 = vpop.f32.mrf.mxu0  ;;  %v676_v26 = vpop.f32.mrf.mxu1 }
 0x177   :  { %v675_v27 = vadd.f32 %v674_v23, %v634_v24  ;;  %v636_v28 = vadd.f32 %v635_v25, %v276_v21 }
 0x178   :  { %v637_v29 = vpop.f32.mrf.mxu0  ;;  %v678_v30 = vpop.f32.mrf.mxu1 }
 0x179   :  { %v677_v31 = vadd.f32 %v676_v26, %v636_v28  ;;  %v681_v32 = vmax.f32 %v675_v27, 0.0 }
 0x17a   :  { %v638_v33 = vpop.f32.mrf.mxu0  ;;  %v679_v34 = vpop.f32.mrf.mxu1 }
 0x17b   :  { %v682_v35 = vmax.f32 %v677_v31, 0.0  ;;  %v683_v37 = vpack.c.bf16 %v681_v32, %v681_v32 }
 0x17d   :  { %v684_v36 = vpack.c.bf16 %v682_v35, %v682_v35 }
 0x17f   :  { %852 = vmatprep.mubr.bf16.mxu0 %v684_v36 }
 0x180   :  { %853 = vmatmul.mubr.bf16.vlgmr.msra.gmra.mxu0 %v683_v37 }
 0x240   :  { %v974_v7 = vpop.f32.mrf.mxu0 }
 0x242   :  { %v975_v38 = vpop.f32.mrf.mxu0 }
 0x243   :  { %v976_v39 = vadd.f32 %v975_v38, %v974_v7 }
 0x244   :  { %v977_v40 = vpop.f32.mrf.mxu0 }
 0x245   :  { %v855_v41 = vadd.f32 %v976_v39, %v941_v8 }
 0x246   :  { %v978_v42 = vpop.f32.mrf.mxu0 }
 0x247   :  { %860 = vst [vmem:[#allocation8] sm:$0xff] %v855_v41 }
 0x248   :  { %1178 = shalt.err (!%p1175_p5)
}
 0x249   :  { %870 = dma.vmem_to_hbm [thread:$0]  %s868_s23, 128, %s1289_s7, [#allocation4]  }
 0x24a   :  { %1191 = dma.done.wait [#allocation4], 128  }
 0x24b   :  { %1192 = vsyncadd [#allocation4], 4294967168 }
 0x24c   :  { %874 = vsyncpa [#allocation3], 1 }
 0x24d   :  { %875 = vsyncpa [#allocation6], 1 }
 0x24e   :  { %876 = vsyncpa [#allocation4], 1 }

</bundles_post_ra>
